<compile_context>
chip_gen: v7x
topology: tpu7x:2x2x1
jax: 0.10.0
libtpu: 0.0.40
codegen_flags: <defaults>
</compile_context>

<pallas_src>
import math
from functools import partial

import numpy as np
import jax
import jax.numpy as jnp
from jax import lax
from jax.experimental import pallas as pl
from jax.experimental.pallas import tpu as pltpu


NEG_SLOPE = 0.01   # LeakyReLU negative slope
OUT_PAD = 32       # per-factor, per-level output lane slot (out_size padded)


# ----------------------------- Pallas kernel -----------------------------

def _iwo_fused_kernel(x_ref, w_ref, out_ref, *,
                      layout, softmax_groups, packed_out, neg_slope):
    """Fully fused IWOModel forward (both factors, all reduction levels).

    x_ref   : (B, input_dim)                bf16, shared input batch
    w_ref   : (R, lane_w)                   bf16, coalesced factor-packed weights
    out_ref : (B, num_levels * packed_out)  f32, lane-dense packed predictions
    """
    num_levels = len(layout)

    def wslice(l, name):
        off, r, c = layout[l][name]          # static Python ints
        return w_ref[off:off + r, 0:c]       # static VMEM ref slice (no DMA)

    # Static lane index for the (compile-time known) softmax group masks.
    lane = lax.broadcasted_iota(jnp.int32, (1, packed_out), 1)

    x_cur = x_ref[...]                       # (B, in) bf16, factor-packed chain
    level_outs = []
    for l in range(num_levels):              # static in-kernel loop over levels
        # projection: x @ wpT (concat at level 0, block-diag across factors after)
        xp = jnp.dot(x_cur, wslice(l, 'wpT'),
                     preferred_element_type=jnp.float32)          # (B, 2*slot)
        xp_b = xp.astype(jnp.bfloat16)

        # Linear(n_l, H) + LeakyReLU, factor-packed hidden (2*H lanes)
        h = jnp.dot(xp_b, wslice(l, 'w1T'), preferred_element_type=jnp.float32)
        h = h + wslice(l, 'b1').astype(jnp.float32)
        h = jnp.where(h >= 0, h, neg_slope * h)

        # Linear(H, H) + LeakyReLU (block-diagonal across factors)
        h = jnp.dot(h.astype(jnp.bfloat16), wslice(l, 'w2T'),
                    preferred_element_type=jnp.float32)
        h = h + wslice(l, 'b2').astype(jnp.float32)
        h = jnp.where(h >= 0, h, neg_slope * h)

        # output heads, zero-padded to packed_out lanes (padded lanes stay 0)
        o = jnp.dot(h.astype(jnp.bfloat16), wslice(l, 'woT'),
                    preferred_element_type=jnp.float32)
        o = o + wslice(l, 'bo').astype(jnp.float32)               # (B, packed_out)

        # static per-factor softmax: only discrete factors, masks are trace-time
        for start, osz in softmax_groups:
            mask = (lane >= start) & (lane < start + osz)
            o_m = jnp.where(mask, o, -1e30)
            m = jnp.max(o_m, axis=-1, keepdims=True)              # group max
            e = jnp.exp(o_m - m)                                  # masked lanes -> 0
            s = jnp.sum(e, axis=-1, keepdims=True)
            o = jnp.where(mask, e / s, o)                         # exact normalize

        level_outs.append(o)
        x_cur = xp_b                          # projection chain stays on-chip

    # single lane-dense store: (B, num_levels * packed_out) == (B, 256)
    out_ref[...] = jnp.concatenate(level_outs, axis=-1)


# ------------------------------ fused wrapper ------------------------------

def iwo_forward_fused(x, raw_params, *, per_factor_training='all', out_pad=OUT_PAD):
    """IWOModel.forward: list (per factor) of lists (per reduction level) of preds."""
    num_factors = len(raw_params)
    num_levels = len(raw_params[0])
    B, input_dim = x.shape
    hidden = raw_params[0][0]['w1'].shape[0]
    slot = raw_params[0][0]['wp'].shape[0]              # first_dim
    out_sizes = [raw_params[f][0]['wo'].shape[0] for f in range(num_factors)]
    assert max(out_sizes) <= out_pad

    P = num_factors * slot          # packed projection width
    HP = num_factors * hidden       # packed hidden width
    OP = num_factors * out_pad      # packed per-level output width
    lane_w = max(P, HP, OP)         # slab lane width

    # ---- pack every weight into one (R, lane_w) slab (host-side, done once) ----
    blocks = []
    layout = []
    row_off = 0

    def add_block(level_dict, name, mat):
        nonlocal row_off
        r, c = mat.shape
        r8 = ((r + 7) // 8) * 8                          # keep 8-sublane alignment
        buf = np.zeros((r8, lane_w), np.float32)
        buf[:r, :c] = mat
        blocks.append(buf)
        level_dict[name] = (row_off, r, c)
        row_off += r8

    for l in range(num_levels):
        ld = {}
        if l == 0:
            # shared input -> lane-concat of the per-factor projections
            wpT = np.concatenate(
                [np.asarray(raw_params[f][0]['wp']).T for f in range(num_factors)],
                axis=1)                                   # (input_dim, P)
        else:
            # chained packed input -> block-diagonal projection
            wpT = np.zeros((P, P), np.float32)
            for f in range(num_factors):
                w = np.asarray(raw_params[f][l]['wp'])    # (n_l, n_{l-1})
                n_out, n_in = w.shape
                wpT[f*slot:f*slot+n_in, f*slot:f*slot+n_out] = w.T
        add_block(ld, 'wpT', wpT)

        w1T = np.zeros((P, HP), np.float32)
        b1 = np.zeros((1, HP), np.float32)
        for f in range(num_factors):
            w = np.asarray(raw_params[f][l]['w1'])        # (H, n_l)
            h_dim, n_l = w.shape
            w1T[f*slot:f*slot+n_l, f*hidden:f*hidden+h_dim] = w.T
            b1[0, f*hidden:(f+1)*hidden] = np.asarray(raw_params[f][l]['b1'])[0]
        add_block(ld, 'w1T', w1T)
        add_block(ld, 'b1', b1)

        w2T = np.zeros((HP, HP), np.float32)
        b2 = np.zeros((1, HP), np.float32)
        for f in range(num_factors):
            w2T[f*hidden:(f+1)*hidden, f*hidden:(f+1)*hidden] = \
                np.asarray(raw_params[f][l]['w2']).T
            b2[0, f*hidden:(f+1)*hidden] = np.asarray(raw_params[f][l]['b2'])[0]
        add_block(ld, 'w2T', w2T)
        add_block(ld, 'b2', b2)

        # output heads: zero-padded to out_pad lanes per factor (keeps padded
        # lanes exactly 0 so packed output slicing / softmax masking is safe)
        woT = np.zeros((HP, OP), np.float32)
        bo = np.zeros((1, OP), np.float32)
        for f in range(num_factors):
            w = np.asarray(raw_params[f][l]['wo'])        # (osz, H)
            osz = w.shape[0]
            woT[f*hidden:(f+1)*hidden, f*out_pad:f*out_pad+osz] = w.T
            bo[0, f*out_pad:f*out_pad+osz] = np.asarray(raw_params[f][l]['bo'])[0]
        add_block(ld, 'woT', woT)
        add_block(ld, 'bo', bo)

        layout.append(ld)

    slab = jnp.asarray(np.concatenate(blocks, axis=0), dtype=jnp.bfloat16)

    # softmax groups are static (discrete factors only)
    softmax_groups = tuple((f * out_pad, out_sizes[f])
                           for f in range(num_factors) if out_sizes[f] > 1)

    # ---- advisory cost estimate for the XLA scheduler ----
    flops = 0
    for l in range(num_levels):
        in_c = input_dim if l == 0 else P
        flops += 2 * B * (in_c * P + P * HP + HP * HP + HP * OP)
    transcendentals = num_levels * B * OP
    bytes_accessed = (x.size * 2 + int(slab.size) * 2
                      + B * num_levels * OP * 4)

    kernel = partial(_iwo_fused_kernel, layout=layout,
                     softmax_groups=softmax_groups,
                     packed_out=OP, neg_slope=NEG_SLOPE)

    packed = pl.pallas_call(
        kernel,
        out_shape=jax.ShapeDtypeStruct((B, num_levels * OP), jnp.float32),
        in_specs=[pl.BlockSpec(memory_space=pltpu.MemorySpace.VMEM),
                  pl.BlockSpec(memory_space=pltpu.MemorySpace.VMEM)],
        out_specs=pl.BlockSpec(memory_space=pltpu.MemorySpace.VMEM),
        cost_estimate=pl.CostEstimate(flops=flops,
                                      transcendentals=transcendentals,
                                      bytes_accessed=bytes_accessed),
    )(x.astype(jnp.bfloat16), slab)

    # ---- unpack to IWOModel.forward structure ----
    pred_factors = []
    for f in range(num_factors):
        if not (str(per_factor_training) == str(f)
                or str(per_factor_training) == 'all'):
            # Fused kernel still computes this factor (negligible work); the
            # returned structure matches IWOModel.forward semantics.
            pred_factors.append(None)
            continue
        osz = out_sizes[f]
        pred_factors.append(
            [packed[:, l * OP + f * out_pad: l * OP + f * out_pad + osz]
             for l in range(num_levels)])
    return pred_factors


# --------------------------- parameter building ---------------------------

def _init_linear(key, out_dim, in_dim):
    """Deterministic synthetic init (torch.nn.Linear-style uniform bounds)."""
    k_w, k_b = jax.random.split(key)
    bound = 1.0 / math.sqrt(in_dim)
    w = jax.random.uniform(k_w, (out_dim, in_dim), jnp.float32, -bound, bound)
    b = jax.random.uniform(k_b, (1, out_dim), jnp.float32, -bound, bound)
    return w, b


def build_iwo_params(key, *, input_dim, first_dim, hidden_dim,
                     factor_sizes, factor_discrete):
    """Builds params mirroring IWOModel.__init__ (one ReductionNet per factor)."""
    params = []
    for fsize, fdisc in zip(factor_sizes, factor_discrete):
        out_size = fsize if fdisc else 1
        key, fkey = jax.random.split(key)
        # projection shapes: (first_dim, input_dim), then (fd-1, fd), ..., (1, 2)
        proj_shapes = [(first_dim, input_dim)]
        for i in range(first_dim - 1):
            proj_shapes.append((first_dim - i - 1, first_dim - i))
        levels = []
        for (n, j) in proj_shapes:
            fkey, k_p, k_1, k_2, k_o = jax.random.split(fkey, 5)
            bound = 1.0 / math.sqrt(j)
            wp = jax.random.uniform(k_p, (n, j), jnp.float32, -bound, bound)
            w1, b1 = _init_linear(k_1, hidden_dim, n)
            w2, b2 = _init_linear(k_2, hidden_dim, hidden_dim)
            wo, bo = _init_linear(k_o, out_size, hidden_dim)
            levels.append(dict(wp=wp, w1=w1, b1=b1, w2=w2, b2=b2,
                               wo=wo, bo=bo, softmax=(out_size > 1)))
        params.append(levels)
    return params


# ----------------------------- pure-JAX reference --------------------------

def iwo_reference(x, raw_params):
    def leaky(v):
        return jnp.where(v >= 0, v, NEG_SLOPE * v)
    preds = []
    for levels in raw_params:
        x_cur = x
        outs = []
        for lv in levels:
            xp = x_cur @ lv['wp'].T
            h = leaky(xp @ lv['w1'].T + lv['b1'])
            h = leaky(h @ lv['w2'].T + lv['b2'])
            o = h @ lv['wo'].T + lv['bo']
            if lv['softmax']:
                o = jax.nn.softmax(o, axis=-1)
            outs.append(o)
            x_cur = xp
        preds.append(outs)
    return preds


# --------------------------------- main -----------------------------------

if __name__ == "__main__":
    B = 8
    INPUT_DIM = 16
    FIRST_DIM = 4
    HIDDEN_DIM = 32
    FACTOR_SIZES = [3, 1]
    FACTOR_DISCRETE = [True, False]

    key = jax.random.PRNGKey(0)
    key, xkey = jax.random.split(key)
    x = jax.random.normal(xkey, (B, INPUT_DIM), jnp.float32)

    params = build_iwo_params(key, input_dim=INPUT_DIM, first_dim=FIRST_DIM,
                              hidden_dim=HIDDEN_DIM,
                              factor_sizes=FACTOR_SIZES,
                              factor_discrete=FACTOR_DISCRETE)

    preds = iwo_forward_fused(x, params, per_factor_training='all')

    leaves = [p for factor in preds if factor is not None for p in factor]
    jax.block_until_ready(leaves)

    # Structure / shape checks.
    assert len(preds) == len(FACTOR_SIZES)
    assert all(len(fct) == FIRST_DIM for fct in preds)
    assert preds[0][0].shape == (B, 3) and preds[1][0].shape == (B, 1)

    # Exact softmax normalization (plain divide, f32).
    for l in range(FIRST_DIM):
        assert bool(jnp.allclose(jnp.sum(preds[0][l], axis=-1), 1.0, atol=1e-4))

    # Numerical check vs the f32 pure-JAX reference (bf16 MXU path -> modest tol).
    ref = iwo_reference(x, params)
    for k in range(len(FACTOR_SIZES)):
        for l in range(FIRST_DIM):
            assert bool(jnp.allclose(preds[k][l], ref[k][l],
                                     rtol=5e-2, atol=5e-2)), \
                f"mismatch at factor {k}, level {l}"

    print("KERNEL_OK")
</pallas_src>

<mosaic_0001>
module attributes {stable_mosaic.version = 11 : i64} {
  func.func @_iwo_fused_kernel(%arg0: memref<8x16xbf16, #tpu.memory_space<vmem>>, %arg1: memref<680x64xbf16, #tpu.memory_space<vmem>>, %arg2: memref<8x256xf32, #tpu.memory_space<vmem>>) attributes {dimension_semantics = [], scalar_prefetch = 0 : i64, scratch_operands = 0 : i64, tpu.core_type = #tpu.core_type<tc>} {
    %0 = tpu.iota {dimensions = array<i32: 1>} : vector<1x64xi32>
    %c0 = arith.constant 0 : index
    %c0_0 = arith.constant 0 : index
    %1 = vector.load %arg0[%c0, %c0_0] : memref<8x16xbf16, #tpu.memory_space<vmem>>, vector<8x16xbf16>
    %c0_1 = arith.constant 0 : index
    %c0_2 = arith.constant 0 : index
    %2 = vector.load %arg1[%c0_1, %c0_2] : memref<680x64xbf16, #tpu.memory_space<vmem>>, vector<16x8xbf16>
    %cst = arith.constant dense<0.000000e+00> : vector<8x8xf32>
    %3 = tpu.matmul %1, %2, %cst {dimension_numbers = #tpu.dot_dimension_numbers<[1], [0], [0], [1], [0, 0, 1, 1], [], []>} : vector<8x16xbf16>, vector<16x8xbf16>, vector<8x8xf32> -> vector<8x8xf32>
    %4 = arith.truncf %3 : vector<8x8xf32> to vector<8x8xbf16>
    %c16 = arith.constant 16 : index
    %c0_3 = arith.constant 0 : index
    %5 = vector.load %arg1[%c16, %c0_3] : memref<680x64xbf16, #tpu.memory_space<vmem>>, vector<8x64xbf16>
    %cst_4 = arith.constant dense<0.000000e+00> : vector<8x64xf32>
    %6 = tpu.matmul %4, %5, %cst_4 {dimension_numbers = #tpu.dot_dimension_numbers<[1], [0], [0], [1], [0, 0, 1, 1], [], []>} : vector<8x8xbf16>, vector<8x64xbf16>, vector<8x64xf32> -> vector<8x64xf32>
    %c24 = arith.constant 24 : index
    %c0_5 = arith.constant 0 : index
    %7 = vector.load %arg1[%c24, %c0_5] : memref<680x64xbf16, #tpu.memory_space<vmem>>, vector<1x64xbf16>
    %8 = arith.extf %7 : vector<1x64xbf16> to vector<1x64xf32>
    %9 = vector.broadcast %8 : vector<1x64xf32> to vector<8x64xf32>
    %10 = arith.addf %6, %9 : vector<8x64xf32>
    %cst_6 = arith.constant 0.000000e+00 : f32
    %11 = vector.broadcast %cst_6 : f32 to vector<8x64xf32>
    %12 = arith.cmpf oge, %10, %11 : vector<8x64xf32>
    %cst_7 = arith.constant 0.00999999977 : f32
    %13 = vector.broadcast %cst_7 : f32 to vector<8x64xf32>
    %14 = arith.mulf %13, %10 : vector<8x64xf32>
    %15 = arith.select %12, %10, %14 : vector<8x64xi1>, vector<8x64xf32>
    %16 = arith.truncf %15 : vector<8x64xf32> to vector<8x64xbf16>
    %c32 = arith.constant 32 : index
    %c0_8 = arith.constant 0 : index
    %17 = vector.load %arg1[%c32, %c0_8] : memref<680x64xbf16, #tpu.memory_space<vmem>>, vector<64x64xbf16>
    %cst_9 = arith.constant dense<0.000000e+00> : vector<8x64xf32>
    %18 = tpu.matmul %16, %17, %cst_9 {dimension_numbers = #tpu.dot_dimension_numbers<[1], [0], [0], [1], [0, 0, 1, 1], [], []>} : vector<8x64xbf16>, vector<64x64xbf16>, vector<8x64xf32> -> vector<8x64xf32>
    %c96 = arith.constant 96 : index
    %c0_10 = arith.constant 0 : index
    %19 = vector.load %arg1[%c96, %c0_10] : memref<680x64xbf16, #tpu.memory_space<vmem>>, vector<1x64xbf16>
    %20 = arith.extf %19 : vector<1x64xbf16> to vector<1x64xf32>
    %21 = vector.broadcast %20 : vector<1x64xf32> to vector<8x64xf32>
    %22 = arith.addf %18, %21 : vector<8x64xf32>
    %cst_11 = arith.constant 0.000000e+00 : f32
    %23 = vector.broadcast %cst_11 : f32 to vector<8x64xf32>
    %24 = arith.cmpf oge, %22, %23 : vector<8x64xf32>
    %cst_12 = arith.constant 0.00999999977 : f32
    %25 = vector.broadcast %cst_12 : f32 to vector<8x64xf32>
    %26 = arith.mulf %25, %22 : vector<8x64xf32>
    %27 = arith.select %24, %22, %26 : vector<8x64xi1>, vector<8x64xf32>
    %28 = arith.truncf %27 : vector<8x64xf32> to vector<8x64xbf16>
    %c104 = arith.constant 104 : index
    %c0_13 = arith.constant 0 : index
    %29 = vector.load %arg1[%c104, %c0_13] : memref<680x64xbf16, #tpu.memory_space<vmem>>, vector<64x64xbf16>
    %cst_14 = arith.constant dense<0.000000e+00> : vector<8x64xf32>
    %30 = tpu.matmul %28, %29, %cst_14 {dimension_numbers = #tpu.dot_dimension_numbers<[1], [0], [0], [1], [0, 0, 1, 1], [], []>} : vector<8x64xbf16>, vector<64x64xbf16>, vector<8x64xf32> -> vector<8x64xf32>
    %c168 = arith.constant 168 : index
    %c0_15 = arith.constant 0 : index
    %31 = vector.load %arg1[%c168, %c0_15] : memref<680x64xbf16, #tpu.memory_space<vmem>>, vector<1x64xbf16>
    %32 = arith.extf %31 : vector<1x64xbf16> to vector<1x64xf32>
    %33 = vector.broadcast %32 : vector<1x64xf32> to vector<8x64xf32>
    %34 = arith.addf %30, %33 : vector<8x64xf32>
    %c0_i32 = arith.constant 0 : i32
    %35 = vector.broadcast %c0_i32 : i32 to vector<1x64xi32>
    %36 = arith.cmpi sge, %0, %35 : vector<1x64xi32>
    %c3_i32 = arith.constant 3 : i32
    %37 = vector.broadcast %c3_i32 : i32 to vector<1x64xi32>
    %38 = arith.cmpi slt, %0, %37 : vector<1x64xi32>
    %39 = arith.andi %36, %38 : vector<1x64xi1>
    %cst_16 = arith.constant -1.000000e+30 : f32
    %40 = vector.shape_cast %39 : vector<1x64xi1> to vector<1x64xi1>
    %41 = vector.broadcast %40 : vector<1x64xi1> to vector<8x64xi1>
    %42 = vector.broadcast %cst_16 : f32 to vector<8x64xf32>
    %43 = arith.select %41, %34, %42 : vector<8x64xi1>, vector<8x64xf32>
    %cst_17 = arith.constant dense<0xFF800000> : vector<8xf32>
    %44 = vector.multi_reduction <maximumf>, %43, %cst_17 [1] : vector<8x64xf32> to vector<8xf32>
    %45 = vector.shape_cast %44 : vector<8xf32> to vector<8x1xf32>
    %46 = vector.broadcast %45 : vector<8x1xf32> to vector<8x64xf32>
    %47 = arith.subf %43, %46 : vector<8x64xf32>
    %48 = math.exp %47 : vector<8x64xf32>
    %cst_18 = arith.constant dense<0.000000e+00> : vector<8xf32>
    %49 = vector.multi_reduction <add>, %48, %cst_18 [1] : vector<8x64xf32> to vector<8xf32>
    %50 = vector.shape_cast %49 : vector<8xf32> to vector<8x1xf32>
    %51 = vector.broadcast %50 : vector<8x1xf32> to vector<8x64xf32>
    %52 = arith.divf %48, %51 : vector<8x64xf32>
    %53 = vector.shape_cast %39 : vector<1x64xi1> to vector<1x64xi1>
    %54 = vector.broadcast %53 : vector<1x64xi1> to vector<8x64xi1>
    %55 = arith.select %54, %52, %34 : vector<8x64xi1>, vector<8x64xf32>
    %c176 = arith.constant 176 : index
    %c0_19 = arith.constant 0 : index
    %56 = vector.load %arg1[%c176, %c0_19] : memref<680x64xbf16, #tpu.memory_space<vmem>>, vector<8x8xbf16>
    %cst_20 = arith.constant dense<0.000000e+00> : vector<8x8xf32>
    %57 = tpu.matmul %4, %56, %cst_20 {dimension_numbers = #tpu.dot_dimension_numbers<[1], [0], [0], [1], [0, 0, 1, 1], [], []>} : vector<8x8xbf16>, vector<8x8xbf16>, vector<8x8xf32> -> vector<8x8xf32>
    %58 = arith.truncf %57 : vector<8x8xf32> to vector<8x8xbf16>
    %c184 = arith.constant 184 : index
    %c0_21 = arith.constant 0 : index
    %59 = vector.load %arg1[%c184, %c0_21] : memref<680x64xbf16, #tpu.memory_space<vmem>>, vector<8x64xbf16>
    %cst_22 = arith.constant dense<0.000000e+00> : vector<8x64xf32>
    %60 = tpu.matmul %58, %59, %cst_22 {dimension_numbers = #tpu.dot_dimension_numbers<[1], [0], [0], [1], [0, 0, 1, 1], [], []>} : vector<8x8xbf16>, vector<8x64xbf16>, vector<8x64xf32> -> vector<8x64xf32>
    %c192 = arith.constant 192 : index
    %c0_23 = arith.constant 0 : index
    %61 = vector.load %arg1[%c192, %c0_23] : memref<680x64xbf16, #tpu.memory_space<vmem>>, vector<1x64xbf16>
    %62 = arith.extf %61 : vector<1x64xbf16> to vector<1x64xf32>
    %63 = vector.broadcast %62 : vector<1x64xf32> to vector<8x64xf32>
    %64 = arith.addf %60, %63 : vector<8x64xf32>
    %cst_24 = arith.constant 0.000000e+00 : f32
    %65 = vector.broadcast %cst_24 : f32 to vector<8x64xf32>
    %66 = arith.cmpf oge, %64, %65 : vector<8x64xf32>
    %cst_25 = arith.constant 0.00999999977 : f32
    %67 = vector.broadcast %cst_25 : f32 to vector<8x64xf32>
    %68 = arith.mulf %67, %64 : vector<8x64xf32>
    %69 = arith.select %66, %64, %68 : vector<8x64xi1>, vector<8x64xf32>
    %70 = arith.truncf %69 : vector<8x64xf32> to vector<8x64xbf16>
    %c200 = arith.constant 200 : index
    %c0_26 = arith.constant 0 : index
    %71 = vector.load %arg1[%c200, %c0_26] : memref<680x64xbf16, #tpu.memory_space<vmem>>, vector<64x64xbf16>
    %cst_27 = arith.constant dense<0.000000e+00> : vector<8x64xf32>
    %72 = tpu.matmul %70, %71, %cst_27 {dimension_numbers = #tpu.dot_dimension_numbers<[1], [0], [0], [1], [0, 0, 1, 1], [], []>} : vector<8x64xbf16>, vector<64x64xbf16>, vector<8x64xf32> -> vector<8x64xf32>
    %c264 = arith.constant 264 : index
    %c0_28 = arith.constant 0 : index
    %73 = vector.load %arg1[%c264, %c0_28] : memref<680x64xbf16, #tpu.memory_space<vmem>>, vector<1x64xbf16>
    %74 = arith.extf %73 : vector<1x64xbf16> to vector<1x64xf32>
    %75 = vector.broadcast %74 : vector<1x64xf32> to vector<8x64xf32>
    %76 = arith.addf %72, %75 : vector<8x64xf32>
    %cst_29 = arith.constant 0.000000e+00 : f32
    %77 = vector.broadcast %cst_29 : f32 to vector<8x64xf32>
    %78 = arith.cmpf oge, %76, %77 : vector<8x64xf32>
    %cst_30 = arith.constant 0.00999999977 : f32
    %79 = vector.broadcast %cst_30 : f32 to vector<8x64xf32>
    %80 = arith.mulf %79, %76 : vector<8x64xf32>
    %81 = arith.select %78, %76, %80 : vector<8x64xi1>, vector<8x64xf32>
    %82 = arith.truncf %81 : vector<8x64xf32> to vector<8x64xbf16>
    %c272 = arith.constant 272 : index
    %c0_31 = arith.constant 0 : index
    %83 = vector.load %arg1[%c272, %c0_31] : memref<680x64xbf16, #tpu.memory_space<vmem>>, vector<64x64xbf16>
    %cst_32 = arith.constant dense<0.000000e+00> : vector<8x64xf32>
    %84 = tpu.matmul %82, %83, %cst_32 {dimension_numbers = #tpu.dot_dimension_numbers<[1], [0], [0], [1], [0, 0, 1, 1], [], []>} : vector<8x64xbf16>, vector<64x64xbf16>, vector<8x64xf32> -> vector<8x64xf32>
    %c336 = arith.constant 336 : index
    %c0_33 = arith.constant 0 : index
    %85 = vector.load %arg1[%c336, %c0_33] : memref<680x64xbf16, #tpu.memory_space<vmem>>, vector<1x64xbf16>
    %86 = arith.extf %85 : vector<1x64xbf16> to vector<1x64xf32>
    %87 = vector.broadcast %86 : vector<1x64xf32> to vector<8x64xf32>
    %88 = arith.addf %84, %87 : vector<8x64xf32>
    %c0_i32_34 = arith.constant 0 : i32
    %89 = vector.broadcast %c0_i32_34 : i32 to vector<1x64xi32>
    %90 = arith.cmpi sge, %0, %89 : vector<1x64xi32>
    %c3_i32_35 = arith.constant 3 : i32
    %91 = vector.broadcast %c3_i32_35 : i32 to vector<1x64xi32>
    %92 = arith.cmpi slt, %0, %91 : vector<1x64xi32>
    %93 = arith.andi %90, %92 : vector<1x64xi1>
    %cst_36 = arith.constant -1.000000e+30 : f32
    %94 = vector.shape_cast %93 : vector<1x64xi1> to vector<1x64xi1>
    %95 = vector.broadcast %94 : vector<1x64xi1> to vector<8x64xi1>
    %96 = vector.broadcast %cst_36 : f32 to vector<8x64xf32>
    %97 = arith.select %95, %88, %96 : vector<8x64xi1>, vector<8x64xf32>
    %cst_37 = arith.constant dense<0xFF800000> : vector<8xf32>
    %98 = vector.multi_reduction <maximumf>, %97, %cst_37 [1] : vector<8x64xf32> to vector<8xf32>
    %99 = vector.shape_cast %98 : vector<8xf32> to vector<8x1xf32>
    %100 = vector.broadcast %99 : vector<8x1xf32> to vector<8x64xf32>
    %101 = arith.subf %97, %100 : vector<8x64xf32>
    %102 = math.exp %101 : vector<8x64xf32>
    %cst_38 = arith.constant dense<0.000000e+00> : vector<8xf32>
    %103 = vector.multi_reduction <add>, %102, %cst_38 [1] : vector<8x64xf32> to vector<8xf32>
    %104 = vector.shape_cast %103 : vector<8xf32> to vector<8x1xf32>
    %105 = vector.broadcast %104 : vector<8x1xf32> to vector<8x64xf32>
    %106 = arith.divf %102, %105 : vector<8x64xf32>
    %107 = vector.shape_cast %93 : vector<1x64xi1> to vector<1x64xi1>
    %108 = vector.broadcast %107 : vector<1x64xi1> to vector<8x64xi1>
    %109 = arith.select %108, %106, %88 : vector<8x64xi1>, vector<8x64xf32>
    %c344 = arith.constant 344 : index
    %c0_39 = arith.constant 0 : index
    %110 = vector.load %arg1[%c344, %c0_39] : memref<680x64xbf16, #tpu.memory_space<vmem>>, vector<8x8xbf16>
    %cst_40 = arith.constant dense<0.000000e+00> : vector<8x8xf32>
    %111 = tpu.matmul %58, %110, %cst_40 {dimension_numbers = #tpu.dot_dimension_numbers<[1], [0], [0], [1], [0, 0, 1, 1], [], []>} : vector<8x8xbf16>, vector<8x8xbf16>, vector<8x8xf32> -> vector<8x8xf32>
    %112 = arith.truncf %111 : vector<8x8xf32> to vector<8x8xbf16>
    %c352 = arith.constant 352 : index
    %c0_41 = arith.constant 0 : index
    %113 = vector.load %arg1[%c352, %c0_41] : memref<680x64xbf16, #tpu.memory_space<vmem>>, vector<8x64xbf16>
    %cst_42 = arith.constant dense<0.000000e+00> : vector<8x64xf32>
    %114 = tpu.matmul %112, %113, %cst_42 {dimension_numbers = #tpu.dot_dimension_numbers<[1], [0], [0], [1], [0, 0, 1, 1], [], []>} : vector<8x8xbf16>, vector<8x64xbf16>, vector<8x64xf32> -> vector<8x64xf32>
    %c360 = arith.constant 360 : index
    %c0_43 = arith.constant 0 : index
    %115 = vector.load %arg1[%c360, %c0_43] : memref<680x64xbf16, #tpu.memory_space<vmem>>, vector<1x64xbf16>
    %116 = arith.extf %115 : vector<1x64xbf16> to vector<1x64xf32>
    %117 = vector.broadcast %116 : vector<1x64xf32> to vector<8x64xf32>
    %118 = arith.addf %114, %117 : vector<8x64xf32>
    %cst_44 = arith.constant 0.000000e+00 : f32
    %119 = vector.broadcast %cst_44 : f32 to vector<8x64xf32>
    %120 = arith.cmpf oge, %118, %119 : vector<8x64xf32>
    %cst_45 = arith.constant 0.00999999977 : f32
    %121 = vector.broadcast %cst_45 : f32 to vector<8x64xf32>
    %122 = arith.mulf %121, %118 : vector<8x64xf32>
    %123 = arith.select %120, %118, %122 : vector<8x64xi1>, vector<8x64xf32>
    %124 = arith.truncf %123 : vector<8x64xf32> to vector<8x64xbf16>
    %c368 = arith.constant 368 : index
    %c0_46 = arith.constant 0 : index
    %125 = vector.load %arg1[%c368, %c0_46] : memref<680x64xbf16, #tpu.memory_space<vmem>>, vector<64x64xbf16>
    %cst_47 = arith.constant dense<0.000000e+00> : vector<8x64xf32>
    %126 = tpu.matmul %124, %125, %cst_47 {dimension_numbers = #tpu.dot_dimension_numbers<[1], [0], [0], [1], [0, 0, 1, 1], [], []>} : vector<8x64xbf16>, vector<64x64xbf16>, vector<8x64xf32> -> vector<8x64xf32>
    %c432 = arith.constant 432 : index
    %c0_48 = arith.constant 0 : index
    %127 = vector.load %arg1[%c432, %c0_48] : memref<680x64xbf16, #tpu.memory_space<vmem>>, vector<1x64xbf16>
    %128 = arith.extf %127 : vector<1x64xbf16> to vector<1x64xf32>
    %129 = vector.broadcast %128 : vector<1x64xf32> to vector<8x64xf32>
    %130 = arith.addf %126, %129 : vector<8x64xf32>
    %cst_49 = arith.constant 0.000000e+00 : f32
    %131 = vector.broadcast %cst_49 : f32 to vector<8x64xf32>
    %132 = arith.cmpf oge, %130, %131 : vector<8x64xf32>
    %cst_50 = arith.constant 0.00999999977 : f32
    %133 = vector.broadcast %cst_50 : f32 to vector<8x64xf32>
    %134 = arith.mulf %133, %130 : vector<8x64xf32>
    %135 = arith.select %132, %130, %134 : vector<8x64xi1>, vector<8x64xf32>
    %136 = arith.truncf %135 : vector<8x64xf32> to vector<8x64xbf16>
    %c440 = arith.constant 440 : index
    %c0_51 = arith.constant 0 : index
    %137 = vector.load %arg1[%c440, %c0_51] : memref<680x64xbf16, #tpu.memory_space<vmem>>, vector<64x64xbf16>
    %cst_52 = arith.constant dense<0.000000e+00> : vector<8x64xf32>
    %138 = tpu.matmul %136, %137, %cst_52 {dimension_numbers = #tpu.dot_dimension_numbers<[1], [0], [0], [1], [0, 0, 1, 1], [], []>} : vector<8x64xbf16>, vector<64x64xbf16>, vector<8x64xf32> -> vector<8x64xf32>
    %c504 = arith.constant 504 : index
    %c0_53 = arith.constant 0 : index
    %139 = vector.load %arg1[%c504, %c0_53] : memref<680x64xbf16, #tpu.memory_space<vmem>>, vector<1x64xbf16>
    %140 = arith.extf %139 : vector<1x64xbf16> to vector<1x64xf32>
    %141 = vector.broadcast %140 : vector<1x64xf32> to vector<8x64xf32>
    %142 = arith.addf %138, %141 : vector<8x64xf32>
    %c0_i32_54 = arith.constant 0 : i32
    %143 = vector.broadcast %c0_i32_54 : i32 to vector<1x64xi32>
    %144 = arith.cmpi sge, %0, %143 : vector<1x64xi32>
    %c3_i32_55 = arith.constant 3 : i32
    %145 = vector.broadcast %c3_i32_55 : i32 to vector<1x64xi32>
    %146 = arith.cmpi slt, %0, %145 : vector<1x64xi32>
    %147 = arith.andi %144, %146 : vector<1x64xi1>
    %cst_56 = arith.constant -1.000000e+30 : f32
    %148 = vector.shape_cast %147 : vector<1x64xi1> to vector<1x64xi1>
    %149 = vector.broadcast %148 : vector<1x64xi1> to vector<8x64xi1>
    %150 = vector.broadcast %cst_56 : f32 to vector<8x64xf32>
    %151 = arith.select %149, %142, %150 : vector<8x64xi1>, vector<8x64xf32>
    %cst_57 = arith.constant dense<0xFF800000> : vector<8xf32>
    %152 = vector.multi_reduction <maximumf>, %151, %cst_57 [1] : vector<8x64xf32> to vector<8xf32>
    %153 = vector.shape_cast %152 : vector<8xf32> to vector<8x1xf32>
    %154 = vector.broadcast %153 : vector<8x1xf32> to vector<8x64xf32>
    %155 = arith.subf %151, %154 : vector<8x64xf32>
    %156 = math.exp %155 : vector<8x64xf32>
    %cst_58 = arith.constant dense<0.000000e+00> : vector<8xf32>
    %157 = vector.multi_reduction <add>, %156, %cst_58 [1] : vector<8x64xf32> to vector<8xf32>
    %158 = vector.shape_cast %157 : vector<8xf32> to vector<8x1xf32>
    %159 = vector.broadcast %158 : vector<8x1xf32> to vector<8x64xf32>
    %160 = arith.divf %156, %159 : vector<8x64xf32>
    %161 = vector.shape_cast %147 : vector<1x64xi1> to vector<1x64xi1>
    %162 = vector.broadcast %161 : vector<1x64xi1> to vector<8x64xi1>
    %163 = arith.select %162, %160, %142 : vector<8x64xi1>, vector<8x64xf32>
    %c512 = arith.constant 512 : index
    %c0_59 = arith.constant 0 : index
    %164 = vector.load %arg1[%c512, %c0_59] : memref<680x64xbf16, #tpu.memory_space<vmem>>, vector<8x8xbf16>
    %cst_60 = arith.constant dense<0.000000e+00> : vector<8x8xf32>
    %165 = tpu.matmul %112, %164, %cst_60 {dimension_numbers = #tpu.dot_dimension_numbers<[1], [0], [0], [1], [0, 0, 1, 1], [], []>} : vector<8x8xbf16>, vector<8x8xbf16>, vector<8x8xf32> -> vector<8x8xf32>
    %166 = arith.truncf %165 : vector<8x8xf32> to vector<8x8xbf16>
    %c520 = arith.constant 520 : index
    %c0_61 = arith.constant 0 : index
    %167 = vector.load %arg1[%c520, %c0_61] : memref<680x64xbf16, #tpu.memory_space<vmem>>, vector<8x64xbf16>
    %cst_62 = arith.constant dense<0.000000e+00> : vector<8x64xf32>
    %168 = tpu.matmul %166, %167, %cst_62 {dimension_numbers = #tpu.dot_dimension_numbers<[1], [0], [0], [1], [0, 0, 1, 1], [], []>} : vector<8x8xbf16>, vector<8x64xbf16>, vector<8x64xf32> -> vector<8x64xf32>
    %c528 = arith.constant 528 : index
    %c0_63 = arith.constant 0 : index
    %169 = vector.load %arg1[%c528, %c0_63] : memref<680x64xbf16, #tpu.memory_space<vmem>>, vector<1x64xbf16>
    %170 = arith.extf %169 : vector<1x64xbf16> to vector<1x64xf32>
    %171 = vector.broadcast %170 : vector<1x64xf32> to vector<8x64xf32>
    %172 = arith.addf %168, %171 : vector<8x64xf32>
    %cst_64 = arith.constant 0.000000e+00 : f32
    %173 = vector.broadcast %cst_64 : f32 to vector<8x64xf32>
    %174 = arith.cmpf oge, %172, %173 : vector<8x64xf32>
    %cst_65 = arith.constant 0.00999999977 : f32
    %175 = vector.broadcast %cst_65 : f32 to vector<8x64xf32>
    %176 = arith.mulf %175, %172 : vector<8x64xf32>
    %177 = arith.select %174, %172, %176 : vector<8x64xi1>, vector<8x64xf32>
    %178 = arith.truncf %177 : vector<8x64xf32> to vector<8x64xbf16>
    %c536 = arith.constant 536 : index
    %c0_66 = arith.constant 0 : index
    %179 = vector.load %arg1[%c536, %c0_66] : memref<680x64xbf16, #tpu.memory_space<vmem>>, vector<64x64xbf16>
    %cst_67 = arith.constant dense<0.000000e+00> : vector<8x64xf32>
    %180 = tpu.matmul %178, %179, %cst_67 {dimension_numbers = #tpu.dot_dimension_numbers<[1], [0], [0], [1], [0, 0, 1, 1], [], []>} : vector<8x64xbf16>, vector<64x64xbf16>, vector<8x64xf32> -> vector<8x64xf32>
    %c600 = arith.constant 600 : index
    %c0_68 = arith.constant 0 : index
    %181 = vector.load %arg1[%c600, %c0_68] : memref<680x64xbf16, #tpu.memory_space<vmem>>, vector<1x64xbf16>
    %182 = arith.extf %181 : vector<1x64xbf16> to vector<1x64xf32>
    %183 = vector.broadcast %182 : vector<1x64xf32> to vector<8x64xf32>
    %184 = arith.addf %180, %183 : vector<8x64xf32>
    %cst_69 = arith.constant 0.000000e+00 : f32
    %185 = vector.broadcast %cst_69 : f32 to vector<8x64xf32>
    %186 = arith.cmpf oge, %184, %185 : vector<8x64xf32>
    %cst_70 = arith.constant 0.00999999977 : f32
    %187 = vector.broadcast %cst_70 : f32 to vector<8x64xf32>
    %188 = arith.mulf %187, %184 : vector<8x64xf32>
    %189 = arith.select %186, %184, %188 : vector<8x64xi1>, vector<8x64xf32>
    %190 = arith.truncf %189 : vector<8x64xf32> to vector<8x64xbf16>
    %c608 = arith.constant 608 : index
    %c0_71 = arith.constant 0 : index
    %191 = vector.load %arg1[%c608, %c0_71] : memref<680x64xbf16, #tpu.memory_space<vmem>>, vector<64x64xbf16>
    %cst_72 = arith.constant dense<0.000000e+00> : vector<8x64xf32>
    %192 = tpu.matmul %190, %191, %cst_72 {dimension_numbers = #tpu.dot_dimension_numbers<[1], [0], [0], [1], [0, 0, 1, 1], [], []>} : vector<8x64xbf16>, vector<64x64xbf16>, vector<8x64xf32> -> vector<8x64xf32>
    %c672 = arith.constant 672 : index
    %c0_73 = arith.constant 0 : index
    %193 = vector.load %arg1[%c672, %c0_73] : memref<680x64xbf16, #tpu.memory_space<vmem>>, vector<1x64xbf16>
    %194 = arith.extf %193 : vector<1x64xbf16> to vector<1x64xf32>
    %195 = vector.broadcast %194 : vector<1x64xf32> to vector<8x64xf32>
    %196 = arith.addf %192, %195 : vector<8x64xf32>
    %c0_i32_74 = arith.constant 0 : i32
    %197 = vector.broadcast %c0_i32_74 : i32 to vector<1x64xi32>
    %198 = arith.cmpi sge, %0, %197 : vector<1x64xi32>
    %c3_i32_75 = arith.constant 3 : i32
    %199 = vector.broadcast %c3_i32_75 : i32 to vector<1x64xi32>
    %200 = arith.cmpi slt, %0, %199 : vector<1x64xi32>
    %201 = arith.andi %198, %200 : vector<1x64xi1>
    %cst_76 = arith.constant -1.000000e+30 : f32
    %202 = vector.shape_cast %201 : vector<1x64xi1> to vector<1x64xi1>
    %203 = vector.broadcast %202 : vector<1x64xi1> to vector<8x64xi1>
    %204 = vector.broadcast %cst_76 : f32 to vector<8x64xf32>
    %205 = arith.select %203, %196, %204 : vector<8x64xi1>, vector<8x64xf32>
    %cst_77 = arith.constant dense<0xFF800000> : vector<8xf32>
    %206 = vector.multi_reduction <maximumf>, %205, %cst_77 [1] : vector<8x64xf32> to vector<8xf32>
    %207 = vector.shape_cast %206 : vector<8xf32> to vector<8x1xf32>
    %208 = vector.broadcast %207 : vector<8x1xf32> to vector<8x64xf32>
    %209 = arith.subf %205, %208 : vector<8x64xf32>
    %210 = math.exp %209 : vector<8x64xf32>
    %cst_78 = arith.constant dense<0.000000e+00> : vector<8xf32>
    %211 = vector.multi_reduction <add>, %210, %cst_78 [1] : vector<8x64xf32> to vector<8xf32>
    %212 = vector.shape_cast %211 : vector<8xf32> to vector<8x1xf32>
    %213 = vector.broadcast %212 : vector<8x1xf32> to vector<8x64xf32>
    %214 = arith.divf %210, %213 : vector<8x64xf32>
    %215 = vector.shape_cast %201 : vector<1x64xi1> to vector<1x64xi1>
    %216 = vector.broadcast %215 : vector<1x64xi1> to vector<8x64xi1>
    %217 = arith.select %216, %214, %196 : vector<8x64xi1>, vector<8x64xf32>
    %218 = tpu.concatenate %55, %109, %163, %217 in 1 : vector<8x64xf32>, vector<8x64xf32>, vector<8x64xf32>, vector<8x64xf32> -> vector<8x256xf32>
    %c0_79 = arith.constant 0 : index
    %c0_80 = arith.constant 0 : index
    %219 = vector.load %arg2[%c0_79, %c0_80] : memref<8x256xf32, #tpu.memory_space<vmem>>, vector<8x256xf32>
    tpu.vector_store %arg2[%c0_79, %c0_80], %218 {strides = array<i32>} : memref<8x256xf32, #tpu.memory_space<vmem>>, vector<8x256xf32>,
    return
  }
}

</mosaic_0001>

<bundles_post_ra>
// kernel: tpu_custom_call.1
= control target key start
LH: loop header
LB: loop body
LE: loop exit
PB: predicated region body
PF: predicated region fallthrough
CT: control target
= control target key end

     0   :  { %v1508_v1 = vmov 0.0   ;;  %vm24_vm0 = vcmask 130048   ;;  %vm1509_vm1 = vmmov 0   ;;  %s1861_s0 = inlined_call_operand.vmem [shape: bf16[8,16], index: 0, kind: input, shape index: {}]   ;;  %s1862_s1 = inlined_call_operand.vmem [shape: bf16[680,64], index: 1, kind: input, shape index: {}]   ;;  %s1863_s2 = inlined_call_operand.hbm [shape: f32[8,256], index: 2, kind: output, shape index: {}]  }
   0x1   :  { %v1435_v0 = vld [vmem:[%s1862_s1] sm:$0xff]   ;;  %1287 = vmatprep.subr.bf16.mxu0 %v1508_v1  ;;  %1293 = vmatprep.subr.bf16.mxu1 %v1508_v1 }
   0x2   :  { %v15_v2 = vld [vmem:[%s1861_s0] sm:$0xf]  ;;  %1288 = vmatpush3.bf16.msra.mxu0 %v1435_v0  ;;  %1289 = vmatprep.mubr.msk.bf16.mxu0 %vm1509_vm1, %v1508_v1 }
   0x3   :  { %1295 = vmatprep.mubr.msk.bf16.mxu1 %vm1509_vm1, %v1508_v1  ;;  %1299 = vmatprep.subr.bf16.mxu0 %v1508_v1 }
   0x5   :  { %1290 = vmatmul.mubr.msk.bf16.vlgmr.msra.gmra.mrb[0].mxu0 %vm24_vm0, %v15_v2 }
   0x6   :  { %1307 = vmatprep.mubr.msk.bf16.mxu0 %vm1509_vm1, %v1508_v1 }
   0x7   :  { %7 = vsyncpa [#allocation3], 0  ;;  %v69_v3 = vld [vmem:[%s1862_s1 + $0x8] sm:$0xf]  ;;  %vm80_vm2 = vcmask 1043456   ;;  %v1436_v5 = vld [vmem:[%s1862_s1 + $0x10] sm:$0xff]   ;;  %v13_v16 = vlaneseq }
   0x8   :  { %v82_v4 = vsel %vm80_vm2, %v69_v3, 0  ;;  %1300 = vmatpush3.bf16.msra.mxu0 %v1436_v5  ;;  %v1437_v6 = vld [vmem:[%s1862_s1 + $0x18] sm:$0xff]   ;;  %vm76_vm3 = vcmask 64512   ;;  %v1438_v12 = vld [vmem:[%s1862_s1 + $0x20] sm:$0xff]   ;;  %v1439_v13 = vld [vmem:[%s1862_s1 + $0x28] sm:$0xff]   ;;  %vm166_vm5 = vcmask 523264  }
   0x9   :  { %1294 = vmatpush3.bf16.msra.mxu1 %v82_v4  ;;  %1301 = vmatprep.subr.bf16.mxu0 %v1508_v1  ;;  %v1440_v14 = vld [vmem:[%s1862_s1 + $0x34] sm:$0xff]   ;;  %v1441_v15 = vld [vmem:[%s1862_s1 + $0x3c] sm:$0xff]   ;;  %v73_v17 = vshrl.u32 %v13_v16, 7  ;;  %v70_v18 = vld [vmem:[%s1862_s1 + $0xc] sm:$0x1]  ;;  %v1635_v58 = vand.u32 127, %v13_v16 }
   0xa   :  { %1311 = vmatprep.subr.bf16.mxu1 %v1508_v1  ;;  %v71_v19 = vunpack.c.l.bf16 %v70_v18  ;;  %v313_v28 = vld [vmem:[%s1862_s1 + $0x58] sm:$0xf]  ;;  %v1442_v32 = vld [vmem:[%s1862_s1 + $0x44] sm:$0xff]   ;;  %v1443_v33 = vld [vmem:[%s1862_s1 + $0x4c] sm:$0xff]   ;;  %s1511_s27 = smov [#allocation2]  }
   0xb   :  { %v1578_v20 = vsub.s32 0, %v73_v17  ;;  %v315_v31 = vsel %vm80_vm2, %v313_v28, 0  ;;  %v136_v34 = vld [vmem:[%s1862_s1 + $0x30] sm:$0x1]  ;;  %v358_v43 = vld [vmem:[%s1862_s1 + $0x5c] sm:$0xf] }
   0xc   :  { %1302 = vmatpush3.bf16.msra.mxu0 %v1437_v6  ;;  %v137_v35 = vunpack.c.l.bf16 %v136_v34  ;;  %v369_v46 = vsel %vm80_vm2, %v358_v43, 0  ;;  %v1444_v52 = vld [vmem:[%s1862_s1 + $0x64] sm:$0xff]   ;;  %v1445_v53 = vld [vmem:[%s1862_s1 + $0x6c] sm:$0xff]   ;;  %v1446_v54 = vld [vmem:[%s1862_s1 + $0x74] sm:$0xff]   ;;  %vm296_vm7 = vcmp.lt.s32.totalorder %v1635_v58, 3  ;;  %s1174_s28 = sshll.u32 %s1511_s27, 4  ;;  %s1175_s28 = int_to_ptr.vmem [resolvable:$true] %s1174_s28 }
   0xd   :  { %1303 = vmatprep.subr.bf16.mxu0 %v1508_v1  ;;  %v75_v21 = vrot.slane %v71_v19, %v1578_v20  ;;  %v1447_v55 = vld [vmem:[%s1862_s1 + $0x7c] sm:$0xff]   ;;  %v222_v56 = vld [vmem:[%s1862_s1 + $0x54] sm:$0x1]  ;;  %v1448_v17 = vld [vmem:[%s1862_s1 + $0x88] sm:$0xff]   ;;  %s1484_s29 = scalar_lea.vmem %s1175_s28, 256  ;;  %p1489_p1 = scmp.lt.s32.totalorder %s1175_s28, %s1175_s28 }
   0xe   :  { %v141_v36 = vrot.slane %v137_v35, %v1578_v20  ;;  %v223_v57 = vunpack.c.l.bf16 %v222_v56  ;;  %v359_v60 = vld [vmem:[%s1862_s1 + $0x60] sm:$0x1]  ;;  %v1449_v18 = vld [vmem:[%s1862_s1 + $0x90] sm:$0xff]   ;;  %v1450_v19 = vld [vmem:[%s1862_s1 + $0x98] sm:$0xff]   ;;  %p1485_p0 = scmp.ne.s32.totalorder %s1175_s28, %s1484_s29  ;;  %p1490_p2 = scmp.lt.s32.totalorder %s1484_s29, %s1484_s29 }
   0xf   :  { %v360_v0 = vunpack.c.l.bf16 %v359_v60  ;;  %v1455_v43 = vld [vmem:[%s1862_s1 + $0xd0] sm:$0xff]  }
  0x10   :  { %1304 = vmatpush3.bf16.msra.mxu0 %v1438_v12  ;;  %v227_v59 = vrot.slane %v223_v57, %v1578_v20  ;;  %p1491_p3 = por %p1490_p2, %p1489_p1 }
  0x11   :  { %1305 = vmatprep.subr.bf16.mxu0 %v1508_v1  ;;  %v364_v6 = vrot.slane %v360_v0, %v1578_v20 }
  0x12   :  { %p1492_p4 = pnand %p1491_p3, %p1485_p0 }
  0x14   :  { %1306 = vmatpush3.bf16.msra.mxu0 %v1439_v13  ;;  %v594_v13 = vld [vmem:[%s1862_s1 + $0xac] sm:$0xf] }
  0x15   :  { %1323 = vmatprep.subr.bf16.mxu0 %v1508_v1  ;;  %v596_v16 = vsel %vm80_vm2, %v594_v13, 0 }
  0xd8   :  { %v62_v7 = vpop.f32.mrb[0].mxu0 }
  0xd9   :  { %v68_v8 = vpack.c.bf16 %v62_v7, %v62_v7  ;;  %v1291_v9 = vpop.f32.mrb[1].mxu0 }
  0xda   :  { %v65_v10 = vpop.f32.mrb[2].mxu0 }
  0xdb   :  { %v1292_v11 = vpop.f32.mrb[3].mxu0  ;;  %1296 = vmatmul.mubr.msk.bf16.vlgmr.msra.gmra.mrb[0].mxu1 %vm76_vm3, %v68_v8 }
  0xdc   :  { %1319 = vmatprep.mubr.msk.bf16.mxu1 %vm1509_vm1, %v1508_v1  ;;  %1312 = vmatpush3.bf16.msra.mxu1 %v1440_v14 }
  0xdd   :  { %1313 = vmatprep.subr.bf16.mxu1 %v1508_v1 }
  0xe0   :  { %1314 = vmatpush3.bf16.msra.mxu1 %v1441_v15 }
  0xe1   :  { %1315 = vmatprep.subr.bf16.mxu1 %v1508_v1 }
  0xe4   :  { %1316 = vmatpush3.bf16.msra.mxu1 %v1442_v32 }
  0xe5   :  { %1317 = vmatprep.subr.bf16.mxu1 %v1508_v1 }
  0xe8   :  { %1318 = vmatpush3.bf16.msra.mxu1 %v1443_v33 }
  0xe9   :  { %1329 = vmatprep.subr.bf16.mxu1 %v1508_v1 }
 0x1ae   :  { %v118_v22 = vpop.f32.mrb[0].mxu1 }
 0x1af   :  { %v119_v23 = vadd.f32 %v118_v22, %v75_v21  ;;  %v1297_v24 = vpop.f32.mrb[1].mxu1  ;;  %v1451_v21 = vld [vmem:[%s1862_s1 + $0xa0] sm:$0xff]  }
 0x1b0   :  { %v121_v25 = vpop.f32.mrb[2].mxu1  ;;  %v423_v22 = vld [vmem:[%s1862_s1 + $0x84] sm:$0x1] }
 0x1b1   :  { %vm124_vm4 = vcmp.ge.f32.partialorder %v119_v23, 0.0  ;;  %v125_v26 = vmul.f32 0.01, %v119_v23  ;;  %v1298_v27 = vpop.f32.mrb[3].mxu1 }
 0x1b3   :  { %v126_v29 = vsel %vm124_vm4, %v119_v23, %v125_v26  ;;  %v424_v23 = vunpack.c.l.bf16 %v423_v22 }
 0x1b4   :  { %v127_v30 = vpack.c.bf16 %v126_v29, %v126_v29 }
 0x1b5   :  { %v428_v24 = vrot.slane %v424_v23, %v1578_v20 }
 0x1b6   :  { %1308 = vmatmul.mubr.msk.bf16.vlgmr.msra.gmra.mrb[4].mxu0 %vm166_vm5, %v127_v30 }
 0x1b7   :  { %1324 = vmatpush3.bf16.msra.mxu0 %v315_v31  ;;  %1325 = vmatprep.mubr.msk.bf16.mxu0 %vm1509_vm1, %v1508_v1  ;;  %v639_v31 = vld [vmem:[%s1862_s1 + $0xb0] sm:$0xf] }
 0x1b8   :  { %1335 = vmatprep.subr.bf16.mxu0 %v1508_v1  ;;  %v650_v34 = vsel %vm80_vm2, %v639_v31, 0  ;;  %v1461_v31 = vld [vmem:[%s1862_s1 + $0x114] sm:$0xff]  }
 0x1be   :  { %1326 = vmatmul.mubr.msk.bf16.vlgmr.msra.gmra.mrb[8].mxu0 %vm76_vm3, %v68_v8 }
 0x1bf   :  { %1343 = vmatprep.mubr.msk.bf16.mxu0 %vm1509_vm1, %v1508_v1  ;;  %1336 = vmatpush3.bf16.msra.mxu0 %v1444_v52 }
 0x1c0   :  { %1337 = vmatprep.subr.bf16.mxu0 %v1508_v1 }
 0x1c3   :  { %1338 = vmatpush3.bf16.msra.mxu0 %v1445_v53 }
 0x1c4   :  { %1339 = vmatprep.subr.bf16.mxu0 %v1508_v1 }
 0x1c7   :  { %1340 = vmatpush3.bf16.msra.mxu0 %v1446_v54 }
 0x1c8   :  { %1341 = vmatprep.subr.bf16.mxu0 %v1508_v1 }
 0x1cb   :  { %1342 = vmatpush3.bf16.msra.mxu0 %v1447_v55 }
 0x1cc   :  { %1359 = vmatprep.subr.bf16.mxu0 %v1508_v1 }
 0x289   :  { %v204_v37 = vpop.f32.mrb[4].mxu0 }
 0x28a   :  { %v205_v38 = vadd.f32 %v204_v37, %v141_v36  ;;  %v1309_v39 = vpop.f32.mrb[5].mxu0 }
 0x28b   :  { %v207_v40 = vpop.f32.mrb[6].mxu0 }
 0x28c   :  { %vm210_vm6 = vcmp.ge.f32.partialorder %v205_v38, 0.0  ;;  %v211_v41 = vmul.f32 0.01, %v205_v38  ;;  %v1310_v42 = vpop.f32.mrb[7].mxu0  ;;  %v1452_v40 = vld [vmem:[%s1862_s1 + $0xb8] sm:$0xff]  }
 0x28d   :  { %v1454_v42 = vld [vmem:[%s1862_s1 + $0xc8] sm:$0xff]  }
 0x28e   :  { %v212_v44 = vsel %vm210_vm6, %v205_v38, %v211_v41  ;;  %v1453_v41 = vld [vmem:[%s1862_s1 + $0xc0] sm:$0xff]  }
 0x28f   :  { %v213_v45 = vpack.c.bf16 %v212_v44, %v212_v44  ;;  %v508_v44 = vld [vmem:[%s1862_s1 + $0xa8] sm:$0x1] }
 0x291   :  { %1320 = vmatmul.mubr.msk.bf16.vlgmr.msra.gmra.mrb[4].mxu1 %vm166_vm5, %v213_v45  ;;  %v351_v47 = vpop.f32.mrb[8].mxu0  ;;  %v509_v45 = vunpack.c.l.bf16 %v508_v44 }
 0x292   :  { %1330 = vmatpush3.bf16.msra.mxu1 %v369_v46  ;;  %v1327_v48 = vpop.f32.mrb[9].mxu0  ;;  %1331 = vmatprep.mubr.msk.bf16.mxu1 %vm1509_vm1, %v1508_v1  ;;  %v357_v51 = vpack.c.bf16 %v351_v47, %v351_v47  ;;  %v640_v47 = vld [vmem:[%s1862_s1 + $0xb4] sm:$0x1] }
 0x293   :  { %v354_v49 = vpop.f32.mrb[10].mxu0  ;;  %1347 = vmatprep.subr.bf16.mxu1 %v1508_v1  ;;  %v513_v46 = vrot.slane %v509_v45, %v1578_v20 }
 0x294   :  { %v1328_v50 = vpop.f32.mrb[11].mxu0 }
 0x299   :  { %1332 = vmatmul.mubr.msk.bf16.vlgmr.msra.gmra.mrb[8].mxu1 %vm76_vm3, %v357_v51 }
 0x29a   :  { %1355 = vmatprep.mubr.msk.bf16.mxu1 %vm1509_vm1, %v1508_v1  ;;  %1348 = vmatpush3.bf16.msra.mxu1 %v1448_v17 }
 0x29b   :  { %1349 = vmatprep.subr.bf16.mxu1 %v1508_v1 }
 0x29e   :  { %1350 = vmatpush3.bf16.msra.mxu1 %v1449_v18 }
 0x29f   :  { %1351 = vmatprep.subr.bf16.mxu1 %v1508_v1 }
 0x2a2   :  { %1352 = vmatpush3.bf16.msra.mxu1 %v1450_v19 }
 0x2a3   :  { %1353 = vmatprep.subr.bf16.mxu1 %v1508_v1 }
 0x2a6   :  { %1354 = vmatpush3.bf16.msra.mxu1 %v1451_v21  ;;  %v920_v21 = vld [vmem:[%s1862_s1 + $0x104] sm:$0xf] }
 0x2a7   :  { %1365 = vmatprep.subr.bf16.mxu1 %v1508_v1 }
 0x364   :  { %v289_v61 = vpop.f32.mrb[4].mxu1 }
 0x365   :  { %v1642_v62 = vadd.f32 %v289_v61, %v227_v59  ;;  %v1321_v63 = vpop.f32.mrb[5].mxu1 }
 0x366   :  { %v292_v2 = vpop.f32.mrb[6].mxu1 }
 0x367   :  { %v1322_v3 = vpop.f32.mrb[7].mxu1  ;;  %v1647_v4 = vsel %vm296_vm7, %v1642_v62, -1e+30  ;;  %v875_v2 = vld [vmem:[%s1862_s1 + $0x100] sm:$0xf] }
 0x368   :  { %v301_v5 = vsel %vm166_vm5, %v1647_v4, -inf }
 0x369   :  { %302 = vmax.xlane.f32.xlu1 %v301_v5 }
 0x36c   :  { %v405_v7 = vpop.f32.mrb[8].mxu1 }
 0x36d   :  { %v406_v8 = vadd.f32 %v405_v7, %v364_v6  ;;  %v1333_v9 = vpop.f32.mrb[9].mxu1  ;;  %v877_v6 = vsel %vm80_vm2, %v875_v2, 0  ;;  %v1456_v7 = vld [vmem:[%s1862_s1 + $0xdc] sm:$0xff]  }
 0x36e   :  { %v408_v10 = vpop.f32.mrb[10].mxu1  ;;  %v1458_v9 = vld [vmem:[%s1862_s1 + $0xec] sm:$0xff]  }
 0x36f   :  { %vm411_vm8 = vcmp.ge.f32.partialorder %v406_v8, 0.0  ;;  %v412_v11 = vmul.f32 0.01, %v406_v8  ;;  %v1334_v12 = vpop.f32.mrb[11].mxu1  ;;  %v1459_v10 = vld [vmem:[%s1862_s1 + $0xf4] sm:$0xff]  }
 0x371   :  { %v413_v14 = vsel %vm411_vm8, %v406_v8, %v412_v11  ;;  %v1457_v8 = vld [vmem:[%s1862_s1 + $0xe4] sm:$0xff]   ;;  %v704_v11 = vld [vmem:[%s1862_s1 + $0xd8] sm:$0x1] }
 0x372   :  { %v414_v15 = vpack.c.bf16 %v413_v14, %v413_v14  ;;  %v705_v12 = vunpack.c.l.bf16 %v704_v11 }
 0x374   :  { %1344 = vmatmul.mubr.msk.bf16.vlgmr.msra.gmra.mrb[12].mxu0 %vm166_vm5, %v414_v15  ;;  %v709_v13 = vrot.slane %v705_v12, %v1578_v20 }
 0x375   :  { %1360 = vmatpush3.bf16.msra.mxu0 %v596_v16  ;;  %1361 = vmatprep.mubr.msk.bf16.mxu0 %vm1509_vm1, %v1508_v1 }
 0x376   :  { %1371 = vmatprep.subr.bf16.mxu0 %v1508_v1 }
 0x37c   :  { %1362 = vmatmul.mubr.msk.bf16.vlgmr.msra.gmra.mrb[16].mxu0 %vm76_vm3, %v357_v51  ;;  %v641_v51 = vunpack.c.l.bf16 %v640_v47 }
 0x37d   :  { %1379 = vmatprep.mubr.msk.bf16.mxu0 %vm1509_vm1, %v1508_v1  ;;  %1372 = vmatpush3.bf16.msra.mxu0 %v1452_v40 }
 0x37e   :  { %1373 = vmatprep.subr.bf16.mxu0 %v1508_v1  ;;  %v645_v56 = vrot.slane %v641_v51, %v1578_v20 }
 0x381   :  { %1374 = vmatpush3.bf16.msra.mxu0 %v1453_v41 }
 0x382   :  { %1375 = vmatprep.subr.bf16.mxu0 %v1508_v1 }
 0x385   :  { %1376 = vmatpush3.bf16.msra.mxu0 %v1454_v42 }
 0x386   :  { %1377 = vmatprep.subr.bf16.mxu0 %v1508_v1 }
 0x389   :  { %1378 = vmatpush3.bf16.msra.mxu0 %v1455_v43 }
 0x38a   :  { %1395 = vmatprep.subr.bf16.mxu0 %v1508_v1 }
 0x447   :  { %v490_v25 = vpop.f32.mrb[12].mxu0 }
 0x448   :  { %v491_v26 = vadd.f32 %v490_v25, %v428_v24  ;;  %v1345_v27 = vpop.f32.mrb[13].mxu0  ;;  %v931_v24 = vsel %vm80_vm2, %v920_v21, 0 }
 0x449   :  { %v493_v28 = vpop.f32.mrb[14].mxu0 }
 0x44a   :  { %vm496_vm9 = vcmp.ge.f32.partialorder %v491_v26, 0.0  ;;  %v497_v29 = vmul.f32 0.01, %v491_v26  ;;  %v1346_v30 = vpop.f32.mrb[15].mxu0 }
 0x44b   :  { %v1460_v30 = vld [vmem:[%s1862_s1 + $0x10c] sm:$0xff]  }
 0x44c   :  { %v498_v32 = vsel %vm496_vm9, %v491_v26, %v497_v29 }
 0x44d   :  { %v499_v33 = vpack.c.bf16 %v498_v32, %v498_v32  ;;  %v1462_v32 = vld [vmem:[%s1862_s1 + $0x11c] sm:$0xff]  }
 0x44f   :  { %1356 = vmatmul.mubr.msk.bf16.vlgmr.msra.gmra.mrb[12].mxu1 %vm166_vm5, %v499_v33  ;;  %v632_v35 = vpop.f32.mrb[16].mxu0  ;;  %v1463_v33 = vld [vmem:[%s1862_s1 + $0x124] sm:$0xff]  }
 0x450   :  { %1366 = vmatpush3.bf16.msra.mxu1 %v650_v34  ;;  %v1363_v36 = vpop.f32.mrb[17].mxu0  ;;  %1367 = vmatprep.mubr.msk.bf16.mxu1 %vm1509_vm1, %v1508_v1  ;;  %v638_v39 = vpack.c.bf16 %v632_v35, %v632_v35  ;;  %v789_v34 = vld [vmem:[%s1862_s1 + $0xfc] sm:$0x1] }
 0x451   :  { %v635_v37 = vpop.f32.mrb[18].mxu0  ;;  %1383 = vmatprep.subr.bf16.mxu1 %v1508_v1  ;;  %v790_v35 = vunpack.c.l.bf16 %v789_v34 }
 0x452   :  { %v1364_v38 = vpop.f32.mrb[19].mxu0  ;;  %v921_v37 = vld [vmem:[%s1862_s1 + $0x108] sm:$0x1] }
 0x453   :  { %v794_v36 = vrot.slane %v790_v35, %v1578_v20  ;;  %v922_v41 = vunpack.c.l.bf16 %v921_v37 }
 0x457   :  { %1368 = vmatmul.mubr.msk.bf16.vlgmr.msra.gmra.mrb[16].mxu1 %vm76_vm3, %v638_v39 }
 0x458   :  { %1391 = vmatprep.mubr.msk.bf16.mxu1 %vm1509_vm1, %v1508_v1  ;;  %1384 = vmatpush3.bf16.msra.mxu1 %v1456_v7 }
 0x459   :  { %1385 = vmatprep.subr.bf16.mxu1 %v1508_v1 }
 0x45c   :  { %1386 = vmatpush3.bf16.msra.mxu1 %v1457_v8 }
 0x45d   :  { %1387 = vmatprep.subr.bf16.mxu1 %v1508_v1 }
 0x460   :  { %1388 = vmatpush3.bf16.msra.mxu1 %v1458_v9 }
 0x461   :  { %1389 = vmatprep.subr.bf16.mxu1 %v1508_v1 }
 0x464   :  { %1390 = vmatpush3.bf16.msra.mxu1 %v1459_v10 }
 0x465   :  { %1401 = vmatprep.subr.bf16.mxu1 %v1508_v1 }
 0x522   :  { %v575_v48 = vpop.f32.mrb[12].mxu1 }
 0x523   :  { %v1717_v49 = vadd.f32 %v575_v48, %v513_v46  ;;  %v1357_v50 = vpop.f32.mrb[13].mxu1  ;;  %v926_v46 = vrot.slane %v922_v41, %v1578_v20 }
 0x524   :  { %v578_v52 = vpop.f32.mrb[14].mxu1 }
 0x525   :  { %v1358_v53 = vpop.f32.mrb[15].mxu1  ;;  %v1722_v54 = vsel %vm296_vm7, %v1717_v49, -1e+30 }
 0x526   :  { %v582_v55 = vsel %vm166_vm5, %v1722_v54, -inf }
 0x527   :  { %583 = vmax.xlane.f32.xlu0 %v582_v55 }
 0x52a   :  { %v686_v57 = vpop.f32.mrb[16].mxu1 }
 0x52b   :  { %v687_v59 = vadd.f32 %v686_v57, %v645_v56  ;;  %v1369_v60 = vpop.f32.mrb[17].mxu1  ;;  %v1464_v57 = vld [vmem:[%s1862_s1 + $0x130] sm:$0xff]  }
 0x52c   :  { %v689_v61 = vpop.f32.mrb[18].mxu1  ;;  %v1466_v60 = vld [vmem:[%s1862_s1 + $0x140] sm:$0xff]  }
 0x52d   :  { %vm692_vm10 = vcmp.ge.f32.partialorder %v687_v59, 0.0  ;;  %v693_v63 = vmul.f32 0.01, %v687_v59  ;;  %v1370_v0 = vpop.f32.mrb[19].mxu1  ;;  %v1467_v61 = vld [vmem:[%s1862_s1 + $0x148] sm:$0xff]  }
 0x52f   :  { %v694_v3 = vsel %vm692_vm10, %v687_v59, %v693_v63  ;;  %v1465_v59 = vld [vmem:[%s1862_s1 + $0x138] sm:$0xff]   ;;  %v985_v63 = vld [vmem:[%s1862_s1 + $0x12c] sm:$0x1] }
 0x530   :  { %v695_v5 = vpack.c.bf16 %v694_v3, %v694_v3  ;;  %v986_v0 = vunpack.c.l.bf16 %v985_v63 }
 0x532   :  { %1380 = vmatmul.mubr.msk.bf16.vlgmr.msra.gmra.mrb[20].mxu0 %vm166_vm5, %v695_v5  ;;  %v990_v2 = vrot.slane %v986_v0, %v1578_v20 }
 0x533   :  { %1396 = vmatpush3.bf16.msra.mxu0 %v877_v6  ;;  %1397 = vmatprep.mubr.msk.bf16.mxu0 %vm1509_vm1, %v1508_v1 }
 0x534   :  { %1407 = vmatprep.subr.bf16.mxu0 %v1508_v1 }
 0x53a   :  { %1398 = vmatmul.mubr.msk.bf16.vlgmr.msra.gmra.mrb[24].mxu0 %vm76_vm3, %v638_v39 }
 0x53b   :  { %1415 = vmatprep.mubr.msk.bf16.mxu0 %vm1509_vm1, %v1508_v1  ;;  %1408 = vmatpush3.bf16.msra.mxu0 %v1460_v30 }
 0x53c   :  { %1409 = vmatprep.subr.bf16.mxu0 %v1508_v1 }
 0x53f   :  { %1410 = vmatpush3.bf16.msra.mxu0 %v1461_v31 }
 0x540   :  { %1411 = vmatprep.subr.bf16.mxu0 %v1508_v1 }
 0x543   :  { %1412 = vmatpush3.bf16.msra.mxu0 %v1462_v32 }
 0x544   :  { %1413 = vmatprep.subr.bf16.mxu0 %v1508_v1 }
 0x547   :  { %1414 = vmatpush3.bf16.msra.mxu0 %v1463_v33 }
 0x5b4   :  { %v584_v11 = vpop.xlane.xlu0 %583 }
 0x5b5   :  { %v585_v12 = vsub.f32 %v1722_v54, %v584_v11 }
 0x605   :  { %v771_v14 = vpop.f32.mrb[20].mxu0 }
 0x606   :  { %v772_v15 = vadd.f32 %v771_v14, %v709_v13  ;;  %v1381_v16 = vpop.f32.mrb[21].mxu0  ;;  %v303_v13 = vpop.xlane.xlu1 %302  ;;  %v1070_v14 = vld [vmem:[%s1862_s1 + $0x150] sm:$0x1]  ;;  %s1510_s1 = smov 64  }
 0x607   :  { %v774_v17 = vpop.f32.mrb[22].mxu0  ;;  %v586_v16 = vmul.f32 1.442695, %v585_v12 }
 0x608   :  { %vm777_vm11 = vcmp.ge.f32.partialorder %v772_v15, 0.0  ;;  %v778_v18 = vmul.f32 0.01, %v772_v15  ;;  %v1382_v19 = vpop.f32.mrb[23].mxu0  ;;  %v1071_v17 = vunpack.c.l.bf16 %v1070_v14 }
 0x609   :  { %1468 = vpow2.f32 %v586_v16 }
 0x60a   :  { %v779_v22 = vsel %vm777_vm11, %v772_v15, %v778_v18  ;;  %v304_v15 = vsub.f32 %v1647_v4, %v303_v13  ;;  %v1075_v19 = vrot.slane %v1071_v17, %v1578_v20 }
 0x60b   :  { %v780_v23 = vpack.c.bf16 %v779_v22, %v779_v22 }
 0x60c   :  { %v305_v18 = vmul.f32 1.442695, %v304_v15 }
 0x60d   :  { %1392 = vmatmul.mubr.msk.bf16.vlgmr.msra.gmra.mrb[20].mxu1 %vm166_vm5, %v780_v23  ;;  %v913_v25 = vpop.f32.mrb[24].mxu0 }
 0x60e   :  { %1402 = vmatpush3.bf16.msra.mxu1 %v931_v24  ;;  %v1399_v26 = vpop.f32.mrb[25].mxu0  ;;  %1403 = vmatprep.mubr.msk.bf16.mxu1 %vm1509_vm1, %v1508_v1  ;;  %v919_v29 = vpack.c.bf16 %v913_v25, %v913_v25  ;;  %1470 = vpow2.f32 %v305_v18 }
 0x60f   :  { %v916_v27 = vpop.f32.mrb[26].mxu0  ;;  %1419 = vmatprep.subr.bf16.mxu1 %v1508_v1 }
 0x610   :  { %v1400_v28 = vpop.f32.mrb[27].mxu0 }
 0x613   :  { %v1469_v27 = vpop.eup %1468 }
 0x614   :  { %v588_v4 = vsel %vm166_vm5, %v1469_v27, 0.0 }
 0x615   :  { %1404 = vmatmul.mubr.msk.bf16.vlgmr.msra.gmra.mrb[24].mxu1 %vm76_vm3, %v919_v29 }
 0x616   :  { %1427 = vmatprep.mubr.msk.bf16.mxu1 %vm1509_vm1, %v1508_v1  ;;  %1420 = vmatpush3.bf16.msra.mxu1 %v1464_v57 }
 0x617   :  { %1421 = vmatprep.subr.bf16.mxu1 %v1508_v1 }
 0x618   :  { %v1471_v28 = vpop.eup %1470 }
 0x619   :  { %v307_v29 = vsel %vm166_vm5, %v1471_v28, 0.0 }
 0x61a   :  { %1422 = vmatpush3.bf16.msra.mxu1 %v1465_v59 }
 0x61b   :  { %1423 = vmatprep.subr.bf16.mxu1 %v1508_v1 }
 0x61e   :  { %1424 = vmatpush3.bf16.msra.mxu1 %v1466_v60 }
 0x61f   :  { %1425 = vmatprep.subr.bf16.mxu1 %v1508_v1 }
 0x622   :  { %1426 = vmatpush3.bf16.msra.mxu1 %v1467_v61 }
 0x6e0   :  { %v856_v38 = vpop.f32.mrb[20].mxu1 }
 0x6e1   :  { %v1791_v39 = vadd.f32 %v856_v38, %v794_v36  ;;  %v1393_v40 = vpop.f32.mrb[21].mxu1 }
 0x6e2   :  { %v859_v42 = vpop.f32.mrb[22].mxu1 }
 0x6e3   :  { %v1394_v43 = vpop.f32.mrb[23].mxu1  ;;  %v1796_v44 = vsel %vm296_vm7, %v1791_v39, -1e+30 }
 0x6e4   :  { %v863_v45 = vsel %vm166_vm5, %v1796_v44, -inf }
 0x6e5   :  { %864 = vmax.xlane.f32.xlu1 %v863_v45 }
 0x6e8   :  { %v967_v47 = vpop.f32.mrb[24].mxu1 }
 0x6e9   :  { %v968_v48 = vadd.f32 %v967_v47, %v926_v46  ;;  %v1405_v50 = vpop.f32.mrb[25].mxu1 }
 0x6ea   :  { %v970_v51 = vpop.f32.mrb[26].mxu1 }
 0x6eb   :  { %vm973_vm12 = vcmp.ge.f32.partialorder %v968_v48, 0.0  ;;  %v974_v52 = vmul.f32 0.01, %v968_v48  ;;  %v1406_v53 = vpop.f32.mrb[27].mxu1 }
 0x6ed   :  { %v975_v55 = vsel %vm973_vm12, %v968_v48, %v974_v52 }
 0x6ee   :  { %v976_v56 = vpack.c.bf16 %v975_v55, %v975_v55 }
 0x6f0   :  { %1416 = vmatmul.mubr.msk.bf16.vlgmr.msra.gmra.mrb[28].mxu0 %vm166_vm5, %v976_v56 }
 0x772   :  { %v865_v20 = vpop.xlane.xlu1 %864 }
 0x773   :  { %v866_v30 = vsub.f32 %v1796_v44, %v865_v20 }
 0x775   :  { %v867_v33 = vmul.f32 1.442695, %v866_v30 }
 0x7c3   :  { %v1052_v3 = vpop.f32.mrb[28].mxu0 }
 0x7c4   :  { %v1053_v5 = vadd.f32 %v1052_v3, %v990_v2  ;;  %v1417_v6 = vpop.f32.mrb[29].mxu0 }
 0x7c5   :  { %v1055_v7 = vpop.f32.mrb[30].mxu0 }
 0x7c6   :  { %vm1058_vm13 = vcmp.ge.f32.partialorder %v1053_v5, 0.0  ;;  %v1059_v8 = vmul.f32 0.01, %v1053_v5  ;;  %v1418_v9 = vpop.f32.mrb[31].mxu0 }
 0x7c8   :  { %v1060_v1 = vsel %vm1058_vm13, %v1053_v5, %v1059_v8 }
 0x7c9   :  { %v1061_v10 = vpack.c.bf16 %v1060_v1, %v1060_v1 }
 0x7cb   :  { %1428 = vmatmul.mubr.msk.bf16.vlgmr.msra.gmra.mrb[28].mxu1 %vm166_vm5, %v1061_v10 }
 0x89e   :  { %v1137_v21 = vpop.f32.mrb[28].mxu1 }
 0x89f   :  { %v1138_v22 = vadd.f32 %v1137_v21, %v1075_v19  ;;  %v1429_v23 = vpop.f32.mrb[29].mxu1 }
 0x8a0   :  { %v1140_v24 = vpop.f32.mrb[30].mxu1 }
 0x8a1   :  { %v1430_v25 = vpop.f32.mrb[31].mxu1  ;;  %v1143_v54 = vsel %vm296_vm7, %v1138_v22, -1e+30 }
 0x8a2   :  { %v1144_v26 = vsel %vm166_vm5, %v1143_v54, -inf }
 0x8a3   :  { %1145 = vmax.xlane.f32.xlu0 %v1144_v26 }
 0x8a7   :  { %589 = vadd.xlane.f32.xlu0 %v588_v4 }
 0x8ab   :  { %308 = vadd.xlane.f32.xlu0 %v307_v29 }
 0x930   :  { %v1146_v31 = vpop.xlane.xlu0 %1145 }
 0x931   :  { %v1147_v32 = vsub.f32 %v1143_v54, %v1146_v31 }
 0x933   :  { %v1148_v34 = vmul.f32 1.442695, %v1147_v32 }
 0x934   :  { %v590_v35 = vpop.xlane.xlu0 %589 }
 0x935   :  { %1472 = vpow2.f32 %v1148_v34 }
 0x936   :  { %1474 = vrcp.f32 %v590_v35 }
 0x937   :  { %1476 = vpow2.f32 %v867_v33 }
 0x938   :  { %v309_v44 = vpop.xlane.xlu0 %308 }
 0x939   :  { %1478 = vrcp.f32 %v309_v44 }
 0x93f   :  { %v1473_v36 = vpop.eup %1472 }
 0x940   :  { %v1475_v37 = vpop.eup %1474  ;;  %v1150_v38 = vsel %vm166_vm5, %v1473_v36, 0.0 }
 0x941   :  { %v1477_v40 = vpop.eup %1476  ;;  %1151 = vadd.xlane.f32.xlu1 %v1150_v38  ;;  %v592_v41 = vmul.f32 %v1475_v37, %v1469_v27 }
 0x942   :  { %v869_v43 = vsel %vm166_vm5, %v1477_v40, 0.0 }
 0x943   :  { %v593_v42 = vsel %vm296_vm7, %v592_v41, %v1717_v49  ;;  %v1479_v45 = vpop.eup %1478 }
 0x944   :  { %1157 = vrot.lane.b32.xlu0 %v593_v42, %s1510_s1  ;;  %v311_v46 = vmul.f32 %v1479_v45, %v1471_v28 }
 0x945   :  { %870 = vadd.xlane.f32.xlu1 %v869_v43 }
 0x946   :  { %v312_v47 = vsel %vm296_vm7, %v311_v46, %v1642_v62 }
 0x9b6   :  { %v1158_v48 = vpop.permute.xlu0 %1157 }
 0x9b7   :  { %v1164_v50 = vsel %vm166_vm5, %v312_v47, %v1158_v48 }
 0x9b8   :  { %1166 = vst [vmem:[#allocation2] sm:$0xff] %v1164_v50 }
 0x9ce   :  { %v1152_v51 = vpop.xlane.xlu1 %1151 }
 0x9cf   :  { %1480 = vrcp.f32 %v1152_v51 }
 0x9d2   :  { %v871_v55 = vpop.xlane.xlu1 %870 }
 0x9d3   :  { %1482 = vrcp.f32 %v871_v55 }
 0x9d9   :  { %v1481_v49 = vpop.eup %1480 }
 0x9da   :  { %v1154_v52 = vmul.f32 %v1481_v49, %v1473_v36 }
 0x9dc   :  { %v1155_v53 = vsel %vm296_vm7, %v1154_v52, %v1138_v22 }
 0x9dd   :  { %1161 = vrot.lane.b32.xlu1 %v1155_v53, %s1510_s1  ;;  %v1483_v56 = vpop.eup %1482 }
 0x9de   :  { %v873_v57 = vmul.f32 %v1483_v56, %v1477_v40 }
 0x9e0   :  { %v874_v62 = vsel %vm296_vm7, %v873_v57, %v1791_v39 }
 0xa4f   :  { %v1162_v59 = vpop.permute.xlu1 %1161 }
 0xa50   :  { %v1165_v60 = vsel %vm166_vm5, %v874_v62, %v1162_v59 }
 0xa51   :  { %1167 = vst [vmem:[#allocation2 + $0x8] sm:$0xff] %v1165_v60 }
 0xa52   :  { %1495 = shalt.err (!%p1492_p4)
}
 0xa53   :  { %s1496_s4 = scalar_lea.hbm %s1863_s2, 256 }
 0xa54   :  { %p1497_p5 = scmp.ne.s32.totalorder %s1863_s2, %s1496_s4  ;;  %p1500_p6 = scmp.lt.u32.totalorder %s1496_s4, %s1863_s2 }
 0xa56   :  { %p1502_p7 = pnand %p1500_p6, %p1497_p5 }
 0xa58   :  { %1505 = shalt.err (!%p1502_p7)
}
 0xa59   :  { %1177 = dma.vmem_to_hbm [thread:$0]  %s1175_s28, 256, %s1863_s2, [#allocation3]  }
 0xa5a   :  { %1506 = dma.done.wait [#allocation3], 256  }
 0xa5b   :  { %1507 = vsyncadd [#allocation3], 4294967040 }
 0xa5c   :  { %1181 = vsyncpa [#allocation3], 1 }

</bundles_post_ra>
